<compile_context>
chip_gen: v5e
topology: v5e:2x2
jax: 0.10.0
libtpu: 0.0.40
codegen_flags: <defaults>
</compile_context>

<pallas_src>
import jax
import jax.numpy as jnp
from jax.experimental import pallas as pl
from jax.experimental.pallas import tpu as pltpu


_VMEM_INPUT_BUDGET = 24 * 1024 * 1024  # bytes for 4 inputs x 2 pipeline buffers
_NUM_CORES = 2                         # exploits both TCs on v7x; harmless elsewhere


def _simsiam_kernel(p1_ref, z2_ref, p2_ref, z1_ref, out_ref, acc_ref):
    """Accumulates sum_b cos(p1,z2) + cos(p2,z1) over batch tiles (per core)."""
    j = pl.program_id(1)  # batch-tile (reduction) axis

    @pl.when(j == 0)
    def _init():
        acc_ref[...] = jnp.zeros_like(acc_ref)

    eps = jnp.float32(1e-12)

    def cos_row_sum(p_ref, z_ref):
        p = p_ref[...].astype(jnp.float32)
        z = z_ref[...].astype(jnp.float32)
        dot = jnp.sum(p * z, axis=1, keepdims=True)   # [TB, 1]
        pp = jnp.sum(p * p, axis=1, keepdims=True)    # [TB, 1]
        zz = jnp.sum(z * z, axis=1, keepdims=True)    # [TB, 1]
        # Matches F.normalize(dim=1, eps=1e-12): clamp each norm separately.
        denom = jnp.maximum(jnp.sqrt(pp), eps) * jnp.maximum(jnp.sqrt(zz), eps)
        cos = dot / denom                              # [TB, 1]
        return jnp.sum(cos, axis=0, keepdims=True)     # [1, 1]

    tile_sum = cos_row_sum(p1_ref, z2_ref) + cos_row_sum(p2_ref, z1_ref)
    acc_ref[...] = acc_ref[...] + tile_sum

    @pl.when(j == pl.num_programs(1) - 1)
    def _finalize():
        out_ref[...] = acc_ref[...].reshape(out_ref.shape)  # one partial per core


def _choose_block_rows(per_core_rows, feat_dim, itemsize):
    """Largest multiple-of-8 batch tile keeping 4 inputs x 2 buffers in budget."""
    tb = _VMEM_INPUT_BUDGET // (8 * feat_dim * itemsize)  # 4 inputs * 2 buffers
    tb = max(8, (tb // 8) * 8)
    tb = min(tb, 1024)
    # No point tiling larger than the (8-aligned) per-core row count.
    tb = min(tb, max(8, ((per_core_rows + 7) // 8) * 8))
    return tb


def simsiam_loss(p1, z2, p2, z1):
    """Pallas-backed SimSiam loss. p1, z2, p2, z1: [B, D] arrays."""
    B, D = p1.shape
    assert z2.shape == (B, D) and p2.shape == (B, D) and z1.shape == (B, D)

    num_cores = _NUM_CORES
    itemsize = jnp.dtype(p1.dtype).itemsize
    per_core = pl.cdiv(B, num_cores)
    tb = _choose_block_rows(per_core, D, itemsize)
    tiles_per_core = pl.cdiv(per_core, tb)
    b_pad = num_cores * tiles_per_core * tb

    def pad(x):
        if b_pad == B:
            return x
        # Zero rows contribute exactly 0 to the cosine sum (dot = 0).
        return jnp.pad(x, ((0, b_pad - B), (0, 0)))

    p1p, z2p, p2p, z1p = pad(p1), pad(z2), pad(p2), pad(z1)

    in_spec = pl.BlockSpec((tb, D), lambda c, j: (c * tiles_per_core + j, 0))
    out_spec = pl.BlockSpec((1, 1, 1), lambda c, j: (c, 0, 0))

    partials = pl.pallas_call(
        _simsiam_kernel,
        out_shape=jax.ShapeDtypeStruct((num_cores, 1, 1), jnp.float32),
        grid_spec=pltpu.PrefetchScalarGridSpec(
            num_scalar_prefetch=0,
            grid=(num_cores, tiles_per_core),
            in_specs=[in_spec, in_spec, in_spec, in_spec],
            out_specs=out_spec,
            scratch_shapes=[pltpu.VMEM((1, 1), jnp.float32)],
        ),
        compiler_params=pltpu.CompilerParams(
            dimension_semantics=("parallel", "arbitrary"),
            vmem_limit_bytes=32 * 1024 * 1024,
        ),
    )(p1p, z2p, p2p, z1p)

    # loss = 0.5*(-mean cos_12 - mean cos_21) = -0.5 * sum(all cosines) / B
    return (-0.5 / jnp.float32(B)) * jnp.sum(partials)


def _reference_loss(p1, z2, p2, z1):
    """Plain-JAX reference mirroring the PyTorch module (sanity check only)."""
    def neg_cos(p, z):
        pn = p / jnp.maximum(jnp.linalg.norm(p, axis=1, keepdims=True), 1e-12)
        zn = z / jnp.maximum(jnp.linalg.norm(z, axis=1, keepdims=True), 1e-12)
        return -jnp.mean(jnp.sum(pn * zn, axis=1))
    return 0.5 * (neg_cos(p1, z2) + neg_cos(p2, z1))


if __name__ == "__main__":
    # SimSiamLoss has no parameters; build deterministic example features.
    B, D = 8, 32  # batch_size, feat_dim
    key = jax.random.PRNGKey(0)
    k1, k2, k3, k4 = jax.random.split(key, 4)
    p1 = jax.random.normal(k1, (B, D), dtype=jnp.float32)
    z2 = jax.random.normal(k2, (B, D), dtype=jnp.float32)
    p2 = jax.random.normal(k3, (B, D), dtype=jnp.float32)
    z1 = jax.random.normal(k4, (B, D), dtype=jnp.float32)

    # Note: .detach() (stop-gradient on z1/z2) only affects backward; the
    # forward value computed here is identical.
    loss = jax.block_until_ready(simsiam_loss(p1, z2, p2, z1))
    ref = jax.block_until_ready(_reference_loss(p1, z2, p2, z1))

    assert jnp.allclose(loss, ref, atol=1e-5, rtol=1e-5), (loss, ref)
    print("KERNEL_OK")
</pallas_src>

<mosaic_0001>
module attributes {stable_mosaic.version = 11 : i64} {
  func.func @_simsiam_kernel(%arg0: i32, %arg1: i32, %arg2: memref<8x32xf32, #tpu.memory_space<vmem>>, %arg3: memref<8x32xf32, #tpu.memory_space<vmem>>, %arg4: memref<8x32xf32, #tpu.memory_space<vmem>>, %arg5: memref<8x32xf32, #tpu.memory_space<vmem>>, %arg6: memref<1x1x1xf32, #tpu.memory_space<vmem>>, %arg7: memref<1x1xf32, #tpu.memory_space<vmem>>) attributes {dimension_semantics = [#tpu.dimension_semantics<parallel>, #tpu.dimension_semantics<arbitrary>], iteration_bounds = array<i64: 2, 1>, scalar_prefetch = 0 : i64, scratch_operands = 1 : i64, tpu.core_type = #tpu.core_type<tc>, window_params = [{transform_indices = @transform_0, window_bounds = array<i64: 8, 32>}, {transform_indices = @transform_1, window_bounds = array<i64: 8, 32>}, {transform_indices = @transform_2, window_bounds = array<i64: 8, 32>}, {transform_indices = @transform_3, window_bounds = array<i64: 8, 32>}, {transform_indices = @transform_4, window_bounds = array<i64: 1, 1, 1>}]} {
    %c0_i32 = arith.constant 0 : i32
    %0 = arith.cmpi eq, %arg1, %c0_i32 : i32
    %1 = arith.extui %0 : i1 to i32
    %c0_i32_0 = arith.constant 0 : i32
    %2 = arith.cmpi ne, %1, %c0_i32_0 : i32
    scf.if %2 {
      %cst_25 = arith.constant 0.000000e+00 : f32
      %52 = vector.broadcast %cst_25 : f32 to vector<1x1xf32>
      %c0_26 = arith.constant 0 : index
      %c0_27 = arith.constant 0 : index
      %53 = vector.load %arg7[%c0_26, %c0_27] : memref<1x1xf32, #tpu.memory_space<vmem>>, vector<1x1xf32>
      tpu.vector_store %arg7[%c0_26, %c0_27], %52 {strides = array<i32>} : memref<1x1xf32, #tpu.memory_space<vmem>>, vector<1x1xf32>,
    } else {
    }
    %c0 = arith.constant 0 : index
    %c0_1 = arith.constant 0 : index
    %3 = vector.load %arg2[%c0, %c0_1] : memref<8x32xf32, #tpu.memory_space<vmem>>, vector<8x32xf32>
    %c0_2 = arith.constant 0 : index
    %c0_3 = arith.constant 0 : index
    %4 = vector.load %arg3[%c0_2, %c0_3] : memref<8x32xf32, #tpu.memory_space<vmem>>, vector<8x32xf32>
    %5 = arith.mulf %3, %4 : vector<8x32xf32>
    %cst = arith.constant dense<0.000000e+00> : vector<8xf32>
    %6 = vector.multi_reduction <add>, %5, %cst [1] : vector<8x32xf32> to vector<8xf32>
    %7 = vector.shape_cast %6 : vector<8xf32> to vector<8x1xf32>
    %8 = arith.mulf %3, %3 : vector<8x32xf32>
    %cst_4 = arith.constant dense<0.000000e+00> : vector<8xf32>
    %9 = vector.multi_reduction <add>, %8, %cst_4 [1] : vector<8x32xf32> to vector<8xf32>
    %10 = vector.shape_cast %9 : vector<8xf32> to vector<8x1xf32>
    %11 = arith.mulf %4, %4 : vector<8x32xf32>
    %cst_5 = arith.constant dense<0.000000e+00> : vector<8xf32>
    %12 = vector.multi_reduction <add>, %11, %cst_5 [1] : vector<8x32xf32> to vector<8xf32>
    %13 = vector.shape_cast %12 : vector<8xf32> to vector<8x1xf32>
    %14 = math.sqrt %10 : vector<8x1xf32>
    %cst_6 = arith.constant 9.99999996E-13 : f32
    %15 = vector.broadcast %cst_6 : f32 to vector<8x1xf32>
    %16 = arith.maximumf %14, %15 : vector<8x1xf32>
    %17 = math.sqrt %13 : vector<8x1xf32>
    %cst_7 = arith.constant 9.99999996E-13 : f32
    %18 = vector.broadcast %cst_7 : f32 to vector<8x1xf32>
    %19 = arith.maximumf %17, %18 : vector<8x1xf32>
    %20 = arith.mulf %16, %19 : vector<8x1xf32>
    %21 = arith.divf %7, %20 : vector<8x1xf32>
    %cst_8 = arith.constant dense<0.000000e+00> : vector<1xf32>
    %22 = vector.multi_reduction <add>, %21, %cst_8 [0] : vector<8x1xf32> to vector<1xf32>
    %23 = vector.shape_cast %22 : vector<1xf32> to vector<1x1xf32>
    %c0_9 = arith.constant 0 : index
    %c0_10 = arith.constant 0 : index
    %24 = vector.load %arg4[%c0_9, %c0_10] : memref<8x32xf32, #tpu.memory_space<vmem>>, vector<8x32xf32>
    %c0_11 = arith.constant 0 : index
    %c0_12 = arith.constant 0 : index
    %25 = vector.load %arg5[%c0_11, %c0_12] : memref<8x32xf32, #tpu.memory_space<vmem>>, vector<8x32xf32>
    %26 = arith.mulf %24, %25 : vector<8x32xf32>
    %cst_13 = arith.constant dense<0.000000e+00> : vector<8xf32>
    %27 = vector.multi_reduction <add>, %26, %cst_13 [1] : vector<8x32xf32> to vector<8xf32>
    %28 = vector.shape_cast %27 : vector<8xf32> to vector<8x1xf32>
    %29 = arith.mulf %24, %24 : vector<8x32xf32>
    %cst_14 = arith.constant dense<0.000000e+00> : vector<8xf32>
    %30 = vector.multi_reduction <add>, %29, %cst_14 [1] : vector<8x32xf32> to vector<8xf32>
    %31 = vector.shape_cast %30 : vector<8xf32> to vector<8x1xf32>
    %32 = arith.mulf %25, %25 : vector<8x32xf32>
    %cst_15 = arith.constant dense<0.000000e+00> : vector<8xf32>
    %33 = vector.multi_reduction <add>, %32, %cst_15 [1] : vector<8x32xf32> to vector<8xf32>
    %34 = vector.shape_cast %33 : vector<8xf32> to vector<8x1xf32>
    %35 = math.sqrt %31 : vector<8x1xf32>
    %cst_16 = arith.constant 9.99999996E-13 : f32
    %36 = vector.broadcast %cst_16 : f32 to vector<8x1xf32>
    %37 = arith.maximumf %35, %36 : vector<8x1xf32>
    %38 = math.sqrt %34 : vector<8x1xf32>
    %cst_17 = arith.constant 9.99999996E-13 : f32
    %39 = vector.broadcast %cst_17 : f32 to vector<8x1xf32>
    %40 = arith.maximumf %38, %39 : vector<8x1xf32>
    %41 = arith.mulf %37, %40 : vector<8x1xf32>
    %42 = arith.divf %28, %41 : vector<8x1xf32>
    %cst_18 = arith.constant dense<0.000000e+00> : vector<1xf32>
    %43 = vector.multi_reduction <add>, %42, %cst_18 [0] : vector<8x1xf32> to vector<1xf32>
    %44 = vector.shape_cast %43 : vector<1xf32> to vector<1x1xf32>
    %45 = arith.addf %23, %44 : vector<1x1xf32>
    %c0_19 = arith.constant 0 : index
    %c0_20 = arith.constant 0 : index
    %46 = vector.load %arg7[%c0_19, %c0_20] : memref<1x1xf32, #tpu.memory_space<vmem>>, vector<1x1xf32>
    %47 = arith.addf %46, %45 : vector<1x1xf32>
    %c0_21 = arith.constant 0 : index
    %c0_22 = arith.constant 0 : index
    %48 = vector.load %arg7[%c0_21, %c0_22] : memref<1x1xf32, #tpu.memory_space<vmem>>, vector<1x1xf32>
    tpu.vector_store %arg7[%c0_21, %c0_22], %47 {strides = array<i32>} : memref<1x1xf32, #tpu.memory_space<vmem>>, vector<1x1xf32>,
    %c0_i32_23 = arith.constant 0 : i32
    %49 = arith.cmpi eq, %arg1, %c0_i32_23 : i32
    %50 = arith.extui %49 : i1 to i32
    %c0_i32_24 = arith.constant 0 : i32
    %51 = arith.cmpi ne, %50, %c0_i32_24 : i32
    scf.if %51 {
      %c0_25 = arith.constant 0 : index
      %c0_26 = arith.constant 0 : index
      %52 = vector.load %arg7[%c0_25, %c0_26] : memref<1x1xf32, #tpu.memory_space<vmem>>, vector<1x1xf32>
      %53 = vector.shape_cast %52 : vector<1x1xf32> to vector<1x1x1xf32>
      %c0_27 = arith.constant 0 : index
      %c0_28 = arith.constant 0 : index
      %c0_29 = arith.constant 0 : index
      %54 = vector.load %arg6[%c0_27, %c0_28, %c0_29] : memref<1x1x1xf32, #tpu.memory_space<vmem>>, vector<1x1x1xf32>
      tpu.vector_store %arg6[%c0_27, %c0_28, %c0_29], %53 {strides = array<i32>} : memref<1x1x1xf32, #tpu.memory_space<vmem>>, vector<1x1x1xf32>,
    } else {
    }
    return
  }
  func.func @transform_0(%arg0: i32, %arg1: i32) -> (i32, i32) {
    %c1_i32 = arith.constant 1 : i32
    %0 = arith.muli %arg0, %c1_i32 : i32
    %1 = arith.addi %0, %arg1 : i32
    %c0_i32 = arith.constant 0 : i32
    %c0_i32_0 = arith.constant 0 : i32
    return %1, %c0_i32 : i32, i32
  }
  func.func @transform_1(%arg0: i32, %arg1: i32) -> (i32, i32) {
    %c1_i32 = arith.constant 1 : i32
    %0 = arith.muli %arg0, %c1_i32 : i32
    %1 = arith.addi %0, %arg1 : i32
    %c0_i32 = arith.constant 0 : i32
    %c0_i32_0 = arith.constant 0 : i32
    return %1, %c0_i32 : i32, i32
  }
  func.func @transform_2(%arg0: i32, %arg1: i32) -> (i32, i32) {
    %c1_i32 = arith.constant 1 : i32
    %0 = arith.muli %arg0, %c1_i32 : i32
    %1 = arith.addi %0, %arg1 : i32
    %c0_i32 = arith.constant 0 : i32
    %c0_i32_0 = arith.constant 0 : i32
    return %1, %c0_i32 : i32, i32
  }
  func.func @transform_3(%arg0: i32, %arg1: i32) -> (i32, i32) {
    %c1_i32 = arith.constant 1 : i32
    %0 = arith.muli %arg0, %c1_i32 : i32
    %1 = arith.addi %0, %arg1 : i32
    %c0_i32 = arith.constant 0 : i32
    %c0_i32_0 = arith.constant 0 : i32
    return %1, %c0_i32 : i32, i32
  }
  func.func @transform_4(%arg0: i32, %arg1: i32) -> (i32, i32, i32) {
    %c0_i32 = arith.constant 0 : i32
    %c0_i32_0 = arith.constant 0 : i32
    %c0_i32_1 = arith.constant 0 : i32
    return %arg0, %c0_i32, %c0_i32_0 : i32, i32, i32
  }
}

</mosaic_0001>

<bundles_post_ra>
// kernel: tpu_custom_call.1
= control target key start
LH: loop header
LB: loop body
LE: loop exit
PB: predicated region body
PF: predicated region fallthrough
CT: control target
= control target key end

     0   :  { %s1089_s0 = inlined_call_operand.hbm [shape: f32[16,32], index: 0, kind: input, shape index: {}]   ;;  %s1090_s1 = inlined_call_operand.hbm [shape: f32[16,32], index: 1, kind: input, shape index: {}]   ;;  %s1091_s2 = inlined_call_operand.hbm [shape: f32[16,32], index: 2, kind: input, shape index: {}]   ;;  %s1092_s3 = inlined_call_operand.hbm [shape: f32[16,32], index: 3, kind: input, shape index: {}]   ;;  %s1093_s4 = inlined_call_operand.vmem [shape: f32[2,1,1], index: 4, kind: output, shape index: {}]  }
   0x1   :  { %1096 = sst [smem:[#allocation14_spill]] %s1089_s0 }
   0x2   :  { %1097 = sst [smem:[#allocation15_spill]] %s1090_s1 }
   0x3   :  { %9 = vsyncpa [#allocation4], 0 }
   0x4   :  { %11 = vsyncpa [#allocation4 + $0x1], 0 }
   0x5   :  { %12 = vsyncpa [#allocation6], 0 }
   0x6   :  { %14 = vsyncpa [#allocation6 + $0x1], 0 }
   0x7   :  { %15 = vsyncpa [#allocation9], 0 }
   0x8   :  { %17 = vsyncpa [#allocation9 + $0x1], 0  ;;  %s941_s15 = smov 0   ;;  %s943_s16 = smov 0  }
   0x9   :  { %s945_s17 = smov 0   ;;  %s947_s18 = smov 0  }
   0xa   :  { %s949_s19 = smov 0   ;;  %s951_s20 = smov 0  }
   0xb LB: > { %s1094_s21 = sadd.s32 4294967295, %s913_s20   ;;  %s35_s22 = sadd.s32 1, %s909_s19  ;;  %s913_s20 = sphi %s951_s20, %s23_s20   ;;  %s909_s19 = sphi %s949_s19, %s1110_s19   ;;  %s905_s18 = sphi %s947_s18, %s1109_s18   ;;  %s901_s17 = sphi %s945_s17, %s1108_s17   ;;  %s897_s16 = sphi %s943_s16, %s1107_s16   ;;  %s893_s15 = sphi %s941_s15, %s1106_s15  }
   0xc   : > { %p37_p0 = scmp.ge.s32.totalorder %s35_s22, 2  ;;  %s44_s23 = sadd.s32 1, %s901_s17 }
   0xd   : > { %p51_p1 = scmp.ne.s32.totalorder %s901_s17, %s897_s16  ;;  %p52_p2 = scmp.eq.s32.totalorder %s913_s20, 0 }
   0xe   : > { %s1112_s22 = smov (%p37_p0, %s35_s22), 0  ;;  %p57_p4 = scmp.ne.s32.totalorder %s897_s16, %s893_s15 }
   0xf   : > { %1098 = sst [smem:[#allocation13_spill]] %s1112_s22  ;;  %p53_p3 = por %p52_p2, %p51_p1 }
  0x10   : > { %s41_s24 = ssub.s32 %s909_s19, %s1112_s22  ;;  %p58_p5 = scmp.eq.s32.totalorder %s1094_s21, 0 }
  0x11   : > { %p42_p6 = scmp.eq.s32.totalorder %s41_s24, 0  ;;  %p673_p8 = scmp.lt.s32.totalorder %s913_s20, 2 }
  0x12   : > { %p982_p7 = por %p58_p5, %p57_p4  ;;  %s991_s27 = sand.u32 1, %s901_s17  }
  0x13   : > { %s988_s26 = scalar_select %p42_p6, %s901_s17, %s44_s23  }
  0x14   : > { %s994_s28 = sshll.u32 %s909_s19, 3  ;;  %s997_s29 = sshll.u32 %s991_s27, 3 }
  0x15   : > { %p999_p9 = pnand %p673_p8, %p53_p3  ;;  %s211_s5 = sand.u32 1, %s913_s20  }
  0x16   : > { %s1101_s1 = sld [smem:[#allocation15_spill]]  ;;  %s215_s9 = scalar_lea.vmem [#allocation5], %s997_s29 }
  0x17   : > { %s224_s10 = sshll.u32 %s215_s9, 4  ;;  %p645_p10 = scmp.ge.s32.totalorder %s913_s20, 1  ;;  %s225_s10 = int_to_ptr.vmem [resolvable:$true] %s224_s10 }
  0x18   : > { %s212_s12 = scalar_lea.sflag [#allocation6], %s211_s5  ;;  %p269_p11 = scmp.lt.s32.totalorder %s913_s20, 3 }
  0x19   : > { %s1103_s0 = sld [smem:[#allocation14_spill]]  ;;  %s195_s24 = scalar_lea.vmem [#allocation3], %s997_s29 }
  0x1a   : > { %p1013_p12 = pnand %p645_p10, %p269_p11  ;;  %s204_s6 = sshll.u32 %s195_s24, 4  ;;  %s205_s6 = int_to_ptr.vmem [resolvable:$true] %s204_s6 }
  0x1b   : > { %s192_s5 = scalar_lea.sflag [#allocation4], %s991_s27  ;;  %s260_s24 = scalar_lea.hbm %s1092_s3, %s994_s28 }
  0x1c   : > { %s220_s8 = scalar_lea.hbm %s1101_s1, %s994_s28  ;;  %s255_s1 = scalar_lea.vmem [#allocation8], %s997_s29 }
  0x1d   : > { %s222_s11 = sshll.u32 %s220_s8, 4  ;;  %s264_s22 = sshll.u32 %s255_s1, 4  ;;  %s223_s11 = int_to_ptr.hbm [resolvable:$true] %s222_s11  ;;  %s265_s22 = int_to_ptr.vmem [resolvable:$true] %s264_s22 }
  0x1e   : > { %666 = dma.hbm_to_vmem [thread:$0]  (!%p999_p9), %s223_s11, 128, %s225_s10, %s212_s12  }
  0x1f   : > { %s200_s23 = scalar_lea.hbm %s1103_s0, %s994_s28  ;;  %s240_s10 = scalar_lea.hbm %s1091_s2, %s994_s28 }
  0x20   : > { %s202_s7 = sshll.u32 %s200_s23, 4  ;;  %s235_s11 = scalar_lea.vmem [#allocation7], %s997_s29  ;;  %s203_s7 = int_to_ptr.hbm [resolvable:$true] %s202_s7 }
  0x21   : > { %663 = dma.hbm_to_vmem [thread:$0]  (!%p999_p9), %s203_s7, 128, %s205_s6, %s192_s5  }
  0x22   : > { %s244_s21 = sshll.u32 %s235_s11, 4  ;;  %s242_s14 = sshll.u32 %s240_s10, 4  ;;  %s245_s21 = int_to_ptr.vmem [resolvable:$true] %s244_s21  ;;  %s243_s14 = int_to_ptr.hbm [resolvable:$true] %s242_s14 }
  0x23   : > { %669 = dma.hbm_to_vmem [thread:$0]  (!%p999_p9), %s243_s14, 128, %s245_s21, %s212_s12  }
  0x24   : > { %s262_s0 = sshll.u32 %s260_s24, 4  ;;  %s252_s6 = scalar_lea.sflag [#allocation9], %s991_s27  ;;  %s263_s0 = int_to_ptr.hbm [resolvable:$true] %s262_s0 }
  0x25   : > { %672 = dma.hbm_to_vmem [thread:$0]  (!%p999_p9), %s263_s0, 128, %s265_s22, %s252_s6  }
  0x26   : > { %273 = sbr.rel (%p1013_p12) target bundleno = 249 (0xf9), region = 36  ;;  %s275_s7 = sand.u32 (!%p1013_p12), 1, %s897_s16  }
  0x27   : > { %s646_s5 = sshll.u32 (!%p1013_p12), %s275_s7, 3  ;;  %s276_s21 = scalar_lea.sflag (!%p1013_p12), [#allocation4], %s275_s7 }
  0x28   : > { %s279_s12 = scalar_lea.vmem (!%p1013_p12), [#allocation3], %s646_s5 }
  0x2b   : > { %880 = dma.done.wait (%p982_p7), %s276_s21, 128  }
  0x2c   : > { %882 = vsyncadd (%p982_p7), %s276_s21, 4294967168  ;;  %s1104_s1 = sadd.s32 4294967295, %s913_s20   ;;  %s289_s0 = scalar_lea.vmem [#allocation5], %s646_s5 }
  0x2d   : > { %s285_s27 = sand.u32 1, %s1104_s1  }
  0x2e   : > { %s286_s28 = scalar_lea.sflag [#allocation6], %s285_s27 }
  0x2f   : > { %884 = dma.done.wait (%p982_p7), %s286_s28, 256  }
  0x30   : > { %886 = vsyncadd (%p982_p7), %s286_s28, 4294967040  ;;  %s299_s22 = scalar_lea.vmem [#allocation7], %s646_s5  ;;  %s306_s29 = scalar_lea.sflag [#allocation9], %s275_s7 }
  0x31   : > { %s309_s30 = scalar_lea.vmem [#allocation8], %s646_s5 }
  0x32   : > { %888 = dma.done.wait (%p982_p7), %s306_s29, 128  }
  0x33   : > { %890 = vsyncadd (%p982_p7), %s306_s29, 4294967168  ;;  %vm359_vm0 = vcmask 0   ;;  %v915_v0 = vmov 0.0   ;;  %vm364_vm1 = vcmask 261120   ;;  %v424_v1 = vld [vmem:[%s299_s22] sm:$0xff]  ;;  %v362_v5 = vld [vmem:[%s289_s0] sm:$0xff] }
  0x34   : > { %360 = vst.msk [vmem:[#allocation2] sm:$0x1] %vm359_vm0, %v915_v0  ;;  %v361_v2 = vld [vmem:[%s279_s12] sm:$0xff]  ;;  %v430_v3 = vmul.f32 %v424_v1, %v424_v1  ;;  %v425_v6 = vld [vmem:[%s309_s30] sm:$0xff]  ;;  %v372_v12 = vmul.f32 %v362_v5, %v362_v5  ;;  %p352_p13 = scmp.lt.s32.totalorder %s905_s18, 1 }
  0x35   : > { %v368_v4 = vmul.f32 %v361_v2, %v361_v2  ;;  %v363_v7 = vmul.f32 %v362_v5, %v361_v2  ;;  %v434_v11 = vmul.f32 %v425_v6, %v425_v6  ;;  %v426_v13 = vmul.f32 %v425_v6, %v424_v1 }
  0x36   : > { %v431_v8 = vsel %vm364_vm1, %v430_v3, 0.0  ;;  %v373_v15 = vsel %vm364_vm1, %v372_v12, 0.0  ;;  %s1114_s18 = smov (!%p352_p13, %s905_s18), 1 }
  0x37   : > { %v369_v9 = vsel %vm364_vm1, %v368_v4, 0.0  ;;  %432 = vadd.xlane.f32.xlu1 %v431_v8  ;;  %v365_v10 = vsel %vm364_vm1, %v363_v7, 0.0  ;;  %v435_v14 = vsel %vm364_vm1, %v434_v11, 0.0  ;;  %v427_v16 = vsel %vm364_vm1, %v426_v13, 0.0  ;;  %s354_s8 = scalar_lea.vmem %s1093_s4, %s1114_s18 }
  0x38   : > { %370 = vadd.xlane.f32.xlu0 %v369_v9  ;;  %366 = vadd.xlane.f32.xlu2 %v365_v10 }
  0x3f   : > { %436 = vadd.xlane.f32.xlu1 %v435_v14 }
  0x40   : > { %374 = vadd.xlane.f32.xlu0 %v373_v15  ;;  %428 = vadd.xlane.f32.xlu2 %v427_v16 }
  0xaa   : > { %v433_v17 = vpop.xlane.xlu1 %432 }
  0xab   : > { %v371_v18 = vpop.xlane.xlu0 %370  ;;  %723 = vrsqrt.f32 %v433_v17  ;;  %vm445_vm2 = vcmp.eq.f32.partialorder %v433_v17, inf  ;;  %vm447_vm4 = vcmp.eq.f32.partialorder %v433_v17, 0.0  ;;  %v448_v47 = vand.u32 2147483648, %v433_v17  ;;  %v367_v3 = vpop.xlane.xlu2 %366 }
  0xac   : > { %725 = vrsqrt.f32 %v371_v18  ;;  %vm383_vm3 = vcmp.eq.f32.partialorder %v371_v18, inf  ;;  %vm385_vm5 = vcmp.eq.f32.partialorder %v371_v18, 0.0  ;;  %v386_v50 = vand.u32 2147483648, %v371_v18 }
  0xb1   : > { %v724_v19 = vpop.eup %723 }
  0xb2   : > { %v726_v20 = vpop.eup %725  ;;  %v439_v21 = vmul.f32 %v724_v19, %v433_v17  ;;  %v437_v22 = vpop.xlane.xlu1 %436 }
  0xb3   : > { %v375_v23 = vpop.xlane.xlu0 %374  ;;  %v377_v24 = vmul.f32 %v726_v20, %v371_v18  ;;  %727 = vrsqrt.f32 %v437_v22  ;;  %vm458_vm6 = vcmp.eq.f32.partialorder %v437_v22, inf  ;;  %vm460_vm7 = vcmp.eq.f32.partialorder %v437_v22, 0.0 }
  0xb4   : > { %v440_v25 = vmul.f32 %v724_v19, %v439_v21  ;;  %729 = vrsqrt.f32 %v375_v23  ;;  %v461_v53 = vand.u32 2147483648, %v437_v22  ;;  %vm396_vm8 = vcmp.eq.f32.partialorder %v375_v23, inf }
  0xb5   : > { %v378_v26 = vmul.f32 %v726_v20, %v377_v24  ;;  %v399_v57 = vand.u32 2147483648, %v375_v23  ;;  %vm398_vm9 = vcmp.eq.f32.partialorder %v375_v23, 0.0 }
  0xb6   : > { %v441_v27 = vmul.f32 0.5, %v440_v25 }
  0xb7   : > { %v379_v28 = vmul.f32 0.5, %v378_v26 }
  0xb8   : > { %v442_v29 = vsub.f32 1.5, %v441_v27 }
  0xb9   : > { %v728_v30 = vpop.eup %727  ;;  %v380_v31 = vsub.f32 1.5, %v379_v28 }
  0xba   : > { %v730_v32 = vpop.eup %729  ;;  %v443_v33 = vmul.f32 %v724_v19, %v442_v29  ;;  %v452_v34 = vmul.f32 %v728_v30, %v437_v22  ;;  %v429_v19 = vpop.xlane.xlu2 %428 }
  0xbb   : > { %v381_v35 = vmul.f32 %v726_v20, %v380_v31  ;;  %v390_v36 = vmul.f32 %v730_v32, %v375_v23 }
  0xbc   : > { %v453_v37 = vmul.f32 %v728_v30, %v452_v34  ;;  %v444_v39 = vmul.f32 %v443_v33, %v433_v17 }
  0xbd   : > { %v391_v38 = vmul.f32 %v730_v32, %v390_v36  ;;  %v382_v41 = vmul.f32 %v381_v35, %v371_v18 }
  0xbe   : > { %v454_v40 = vmul.f32 0.5, %v453_v37  ;;  %v446_v45 = vsel %vm445_vm2, %v433_v17, %v444_v39  ;;  %v487_v39 = vld [vmem:[#allocation2] sm:$0x1] }
  0xbf   : > { %v392_v42 = vmul.f32 0.5, %v391_v38  ;;  %v384_v48 = vsel %vm383_vm3, %v371_v18, %v382_v41  ;;  %v449_v52 = vsel %vm447_vm4, %v448_v47, %v446_v45 }
  0xc0   : > { %v455_v43 = vsub.f32 1.5, %v454_v40  ;;  %v387_v55 = vsel %vm385_vm5, %v386_v50, %v384_v48  ;;  %v450_v60 = vmax.f32 %v449_v52, 1e-12 }
  0xc1   : > { %v393_v44 = vsub.f32 1.5, %v392_v42  ;;  %v388_v63 = vmax.f32 %v387_v55, 1e-12 }
  0xc2   : > { %v456_v46 = vmul.f32 %v728_v30, %v455_v43 }
  0xc3   : > { %v394_v49 = vmul.f32 %v730_v32, %v393_v44 }
  0xc4   : > { %v457_v51 = vmul.f32 %v456_v46, %v437_v22 }
  0xc5   : > { %v395_v54 = vmul.f32 %v394_v49, %v375_v23 }
  0xc6   : > { %v459_v56 = vsel %vm458_vm6, %v437_v22, %v457_v51 }
  0xc7   : > { %v462_v58 = vsel %vm460_vm7, %v461_v53, %v459_v56  ;;  %v397_v59 = vsel %vm396_vm8, %v375_v23, %v395_v54 }
  0xc8   : > { %v463_v61 = vmax.f32 %v462_v58, 1e-12  ;;  %v400_v62 = vsel %vm398_vm9, %v399_v57, %v397_v59 }
  0xc9   : > { %v401_v0 = vmax.f32 %v400_v62, 1e-12 }
  0xca   : > { %v464_v1 = vmul.f32 %v463_v61, %v450_v60 }
  0xcb   : > { %v402_v2 = vmul.f32 %v401_v0, %v388_v63 }
  0xcc   : > { %731 = vrcp.f32 %v464_v1  ;;  %v476_v10 = vand.u32 2147483648, %v464_v1  ;;  %v474_v13 = vand.u32 2147483647, %v464_v1  ;;  %vm470_vm12 = vweird.f32 %v464_v1 }
  0xcd   : > { %733 = vrcp.f32 %v402_v2  ;;  %v414_v11 = vand.u32 2147483648, %v402_v2  ;;  %v412_v15 = vand.u32 2147483647, %v402_v2  ;;  %vm408_vm13 = vweird.f32 %v402_v2 }
  0xce   : > { %v477_v18 = vor.u32 1.1754944e-38, %v476_v10  ;;  %vm475_vm1 = vcmp.eq.f32.partialorder %v474_v13, 8.507059e+37 }
  0xcf   : > { %v415_v20 = vor.u32 1.1754944e-38, %v414_v11  ;;  %vm413_vm2 = vcmp.eq.f32.partialorder %v412_v15, 8.507059e+37 }
  0xd2   : > { %v732_v4 = vpop.eup %731 }
  0xd3   : > { %v734_v5 = vpop.eup %733  ;;  %v466_v6 = vmul.f32 %v732_v4, %v464_v1  ;;  %vm471_vm10 = vweird.f32 %v732_v4 }
  0xd4   : > { %v404_v7 = vmul.f32 %v734_v5, %v402_v2  ;;  %vm409_vm11 = vweird.f32 %v734_v5  ;;  %vm472_vm14 = vmor %vm470_vm12, %vm471_vm10 }
  0xd5   : > { %v467_v8 = vsub.f32 1.0, %v466_v6  ;;  %vm410_vm15 = vmor %vm408_vm13, %vm409_vm11 }
  0xd6   : > { %v405_v9 = vsub.f32 1.0, %v404_v7 }
  0xd7   : > { %v468_v12 = vmul.f32 %v732_v4, %v467_v8 }
  0xd8   : > { %v406_v14 = vmul.f32 %v734_v5, %v405_v9 }
  0xd9   : > { %v469_v16 = vadd.f32 %v732_v4, %v468_v12 }
  0xda   : > { %v407_v17 = vadd.f32 %v734_v5, %v406_v14 }
  0xdb   : > { %v473_v21 = vsel %vm472_vm14, %v732_v4, %v469_v16 }
  0xdc   : > { %v411_v22 = vsel %vm410_vm15, %v734_v5, %v407_v17  ;;  %v478_v23 = vsel %vm475_vm1, %v477_v18, %v473_v21 }
  0xdd   : > { %v416_v24 = vsel %vm413_vm2, %v415_v20, %v411_v22  ;;  %v479_v25 = vmul.f32 %v478_v23, %v429_v19 }
  0xde   : > { %v417_v26 = vmul.f32 %v416_v24, %v367_v3 }
  0xdf   : > { %v480_v27 = vrot.slane %v479_v25, 4 }
  0xe0   : > { %v418_v28 = vrot.slane %v417_v26, 4 }
  0xe1   : > { %v481_v29 = vadd.f32 %v480_v27, %v479_v25 }
  0xe2   : > { %v419_v30 = vadd.f32 %v418_v28, %v417_v26 }
  0xe3   : > { %v482_v31 = vrot.slane %v481_v29, 2 }
  0xe4   : > { %v420_v32 = vrot.slane %v419_v30, 2 }
  0xe5   : > { %v483_v33 = vadd.f32 %v482_v31, %v481_v29 }
  0xe6   : > { %v421_v34 = vadd.f32 %v420_v32, %v419_v30 }
  0xe7   : > { %v484_v35 = vrot.slane %v483_v33, 1 }
  0xe8   : > { %v422_v36 = vrot.slane %v421_v34, 1 }
  0xe9   : > { %v485_v37 = vadd.f32 %v484_v35, %v483_v33 }
  0xea   : > { %v423_v38 = vadd.f32 %v422_v36, %v421_v34 }
  0xec   : > { %v486_v40 = vadd.f32 %v485_v37, %v423_v38 }
  0xee   : > { %v488_v41 = vadd.f32 %v487_v39, %v486_v40 }
  0xf0   : > { %490 = vst.msk [vmem:[#allocation2] sm:$0x1] %vm359_vm0, %v488_v41 }
  0xf7   : > { %v494_v42 = vld [vmem:[#allocation2] sm:$0x1] }
  0xf8   : > { %495 = vst.msk [vmem:[%s354_s8] sm:$0x1] %vm359_vm0, %v494_v42 }
  0xf9 PF: > { %s23_s20 = sadd.s32 1, %s913_s20   ;;  %s1105_s9 = sld [smem:[#allocation13_spill]] }
  0xfa   : > { %p20_p0 = scmp.ge.s32.totalorder %s23_s20, 4   ;;  %s1106_s15 = smov %s897_s16 }
  0xfb   : > { %s1107_s16 = smov %s901_s17  ;;  %s1108_s17 = smov %s988_s26 }
  0xfc   : > { %s1109_s18 = smov %s909_s19  ;;  %22 = sbr.rel (!%p20_p0) target bundleno = 11 (0xb), region = 121 }
  0xff   : > { %s1110_s19 = smov %s1105_s9 }
 0x101   :  { %513 = vsyncpa [#allocation4], 1 }
 0x102   :  { %515 = vsyncpa [#allocation4 + $0x1], 1 }
 0x103   :  { %516 = vsyncpa [#allocation6], 1 }
 0x104   :  { %518 = vsyncpa [#allocation6 + $0x1], 1 }
 0x105   :  { %519 = vsyncpa [#allocation9], 1 }
 0x106   :  { %521 = vsyncpa [#allocation9 + $0x1], 1 }

</bundles_post_ra>
